<compile_context>
chip_gen: v7x
topology: tpu7x:2x2x1
jax: 0.10.0
libtpu: 0.0.40
codegen_flags: <defaults>
</compile_context>

<pallas_src>
import functools

import jax
import jax.numpy as jnp
import numpy as np
from jax.experimental import pallas as pl
from jax.experimental.pallas import tpu as pltpu


# ----------------------------- Pallas kernel --------------------------------
def _output_pp_kernel(num_nodes, use_activation,
                      src_ref, rbf_ref, m_ref,
                      w_rbf_ref, w_up_ref, w_dense_ref, b_dense_ref, w_final_ref,
                      out_ref, acc_ref):
    k = pl.program_id(0)
    n_pad, _ = acc_ref.shape
    te = src_ref.shape[1]
    num_dense = w_dense_ref.shape[0]

    @pl.when(k == 0)
    def _():
        acc_ref[...] = jnp.zeros_like(acc_ref)

    # tmp = m * dense_rbf(rbf)                              [TE, emb]  (bf16 operands, f32 acc)
    proj = jnp.dot(rbf_ref[...], w_rbf_ref[...], preferred_element_type=jnp.float32)
    tmp = (m_ref[...].astype(jnp.float32) * proj).astype(jnp.bfloat16)

    # reverse-graph edge->node segment sum for this edge tile:
    #   mask[v, e] = 1 iff src[e] == v   (padded edges carry src == -1 -> zero column)
    node_ids = jax.lax.broadcasted_iota(jnp.int32, (n_pad, te), 0)
    mask = (node_ids == src_ref[...]).astype(jnp.bfloat16)           # [n_pad, TE]
    acc_ref[...] += jnp.dot(mask, tmp, preferred_element_type=jnp.float32)

    # finalize on the last edge tile: dense chain + readout
    @pl.when(k == pl.num_programs(0) - 1)
    def _():
        t = jnp.dot(acc_ref[...].astype(jnp.bfloat16), w_up_ref[...],
                    preferred_element_type=jnp.float32)               # [n_pad, out_emb]
        for i in range(num_dense):
            t = jnp.dot(t.astype(jnp.bfloat16), w_dense_ref[i],
                        preferred_element_type=jnp.float32) + b_dense_ref[i]
            if use_activation:
                t = jax.nn.silu(t)                                    # swish, f32 on VPU/EUP
        if n_pad != num_nodes:
            # padded node rows picked up dense-layer biases; zero them before the readout.
            valid = (jax.lax.broadcasted_iota(jnp.int32, (n_pad, 1), 0)
                     < num_nodes).astype(jnp.float32)
            t = t * valid
        # readout_nodes(op='sum') then dense_final (no bias):
        #   sum_N(t) @ W_final == sum_N(t @ W_final)
        t_sum = jnp.sum(t, axis=0, keepdims=True)                     # [1, out_emb]
        out_ref[...] = jnp.dot(t_sum.astype(jnp.bfloat16), w_final_ref[...],
                               preferred_element_type=jnp.float32)


def output_pp_block(rbf, m, src, params, *, num_nodes, use_activation=True, edge_tile=128):
    """OutputPPBlock forward as one fused Pallas call.

    rbf: [E, num_radial] float32
    m:   [E, emb_size]   float32
    src: [E] int32, original source node of each edge (edge->node sum target)
    returns: [1, num_targets] float32
    """
    E, num_radial = rbf.shape
    emb_size = m.shape[1]
    num_targets = params["w_final"].shape[1]

    TE = edge_tile                                  # multiple of 128 (lane-aligned edge tile)
    E_pad = pl.cdiv(E, TE) * TE
    N_pad = max(8, ((num_nodes + 7) // 8) * 8)

    # Pad the edge axis; padded edges get src = -1 so their scatter-mask column is zero.
    rbf_p = jnp.zeros((E_pad, num_radial), jnp.bfloat16).at[:E].set(rbf.astype(jnp.bfloat16))
    m_p = jnp.zeros((E_pad, emb_size), jnp.bfloat16).at[:E].set(m.astype(jnp.bfloat16))
    src_p = jnp.full((1, E_pad), -1, jnp.int32).at[0, :E].set(src.astype(jnp.int32))

    w_rbf = params["w_rbf"].astype(jnp.bfloat16)
    w_up = params["w_up"].astype(jnp.bfloat16)
    w_dense = params["w_dense"].astype(jnp.bfloat16)
    b_dense = params["b_dense"].astype(jnp.float32)
    w_final = params["w_final"].astype(jnp.bfloat16)

    def const_spec(x):
        nd = x.ndim
        return pl.BlockSpec(x.shape, lambda k, _nd=nd: (0,) * _nd)   # resident across E tiles

    kernel = functools.partial(_output_pp_kernel, num_nodes, use_activation)

    return pl.pallas_call(
        kernel,
        out_shape=jax.ShapeDtypeStruct((1, num_targets), jnp.float32),
        grid_spec=pltpu.PrefetchScalarGridSpec(
            num_scalar_prefetch=0,
            grid=(E_pad // TE,),
            in_specs=[
                pl.BlockSpec((1, TE), lambda k: (0, k)),              # src (edge tile)
                pl.BlockSpec((TE, num_radial), lambda k: (k, 0)),     # rbf (edge tile)
                pl.BlockSpec((TE, emb_size), lambda k: (k, 0)),       # m   (edge tile)
                const_spec(w_rbf),
                const_spec(w_up),
                const_spec(w_dense),
                const_spec(b_dense),
                const_spec(w_final),
            ],
            out_specs=pl.BlockSpec((1, num_targets), lambda k: (0, 0)),
            scratch_shapes=[pltpu.VMEM((N_pad, emb_size), jnp.float32)],   # t accumulator
        ),
        compiler_params=pltpu.CompilerParams(dimension_semantics=("arbitrary",)),
    )(src_p, rbf_p, m_p, w_rbf, w_up, w_dense, b_dense, w_final)


# ------------------------------ reference -----------------------------------
def reference(rbf, m, src, params, *, num_nodes, use_activation=True):
    """Pure-JAX reference with the same bf16 operand / f32 accumulation casting."""
    rbf_b = rbf.astype(jnp.bfloat16)
    m_b = m.astype(jnp.bfloat16)
    w_rbf = params["w_rbf"].astype(jnp.bfloat16)
    w_up = params["w_up"].astype(jnp.bfloat16)
    w_dense = params["w_dense"].astype(jnp.bfloat16)
    b_dense = params["b_dense"].astype(jnp.float32)
    w_final = params["w_final"].astype(jnp.bfloat16)

    proj = jnp.dot(rbf_b, w_rbf, preferred_element_type=jnp.float32)
    tmp = (m_b.astype(jnp.float32) * proj).astype(jnp.bfloat16)
    t = jax.ops.segment_sum(tmp.astype(jnp.float32), src, num_segments=num_nodes)
    t = jnp.dot(t.astype(jnp.bfloat16), w_up, preferred_element_type=jnp.float32)
    for i in range(w_dense.shape[0]):
        t = jnp.dot(t.astype(jnp.bfloat16), w_dense[i],
                    preferred_element_type=jnp.float32) + b_dense[i]
        if use_activation:
            t = jax.nn.silu(t)
    t_sum = jnp.sum(t, axis=0, keepdims=True)
    return jnp.dot(t_sum.astype(jnp.bfloat16), w_final, preferred_element_type=jnp.float32)


# ------------------------------- params -------------------------------------
def init_params(key, emb_size, out_emb_size, num_radial, num_dense, num_targets):
    def glorot(k, shape):  # deterministic Glorot-normal stand-in for GlorotOrthogonal
        fan_in, fan_out = shape
        scale = jnp.sqrt(2.0 / (fan_in + fan_out))
        return scale * jax.random.normal(k, shape, dtype=jnp.float32)

    ks = jax.random.split(key, 4 + num_dense)
    w_rbf = glorot(ks[0], (num_radial, emb_size))               # dense_rbf.weight^T
    w_up = glorot(ks[1], (emb_size, out_emb_size))              # up_projection.weight^T
    w_dense = jnp.stack([glorot(ks[3 + i], (out_emb_size, out_emb_size))
                         for i in range(num_dense)])            # [num_dense, out, out]
    b_dense = 0.01 * jax.random.normal(ks[2], (num_dense, 1, out_emb_size), dtype=jnp.float32)
    w_final = glorot(ks[3 + num_dense], (out_emb_size, num_targets))  # dense_final.weight^T
    return dict(w_rbf=w_rbf, w_up=w_up, w_dense=w_dense, b_dense=b_dense, w_final=w_final)


# -------------------------------- main ---------------------------------------
if __name__ == "__main__":
    emb_size, out_emb_size, num_radial = 32, 64, 8
    num_dense, num_targets = 3, 4
    N, E = 64, 512   # nodes, edges of a small synthetic graph (4 edge tiles of 128)

    key = jax.random.PRNGKey(0)
    k_p, k_rbf, k_m, k_src = jax.random.split(key, 4)

    params = init_params(k_p, emb_size, out_emb_size, num_radial, num_dense, num_targets)
    rbf = jax.random.normal(k_rbf, (E, num_radial), dtype=jnp.float32)
    m = jax.random.normal(k_m, (E, emb_size), dtype=jnp.float32)
    src = jax.random.randint(k_src, (E,), 0, N, dtype=jnp.int32)

    out = output_pp_block(rbf, m, src, params, num_nodes=N, use_activation=True)
    out = jax.block_until_ready(out)

    ref = reference(rbf, m, src, params, num_nodes=N, use_activation=True)
    np.testing.assert_allclose(np.asarray(out), np.asarray(ref), rtol=1e-2, atol=1e-2)

    print("KERNEL_OK")
</pallas_src>

<mosaic_0001>
module attributes {stable_mosaic.version = 11 : i64} {
  func.func @_output_pp_kernel(%arg0: i32, %arg1: memref<1x128xi32, #tpu.memory_space<vmem>>, %arg2: memref<128x8xbf16, #tpu.memory_space<vmem>>, %arg3: memref<128x32xbf16, #tpu.memory_space<vmem>>, %arg4: memref<8x32xbf16, #tpu.memory_space<vmem>>, %arg5: memref<32x64xbf16, #tpu.memory_space<vmem>>, %arg6: memref<3x64x64xbf16, #tpu.memory_space<vmem>>, %arg7: memref<3x1x64xf32, #tpu.memory_space<vmem>>, %arg8: memref<64x4xbf16, #tpu.memory_space<vmem>>, %arg9: memref<1x4xf32, #tpu.memory_space<vmem>>, %arg10: memref<64x32xf32, #tpu.memory_space<vmem>>) attributes {dimension_semantics = [#tpu.dimension_semantics<arbitrary>], iteration_bounds = array<i64: 4>, scalar_prefetch = 0 : i64, scratch_operands = 1 : i64, tpu.core_type = #tpu.core_type<tc>, window_params = [{transform_indices = @transform_0, window_bounds = array<i64: 1, 128>}, {transform_indices = @transform_1, window_bounds = array<i64: 128, 8>}, {transform_indices = @transform_2, window_bounds = array<i64: 128, 32>}, {pipeline_mode = #tpu.pipeline_mode<synchronous>, transform_indices = @transform_3, window_bounds = array<i64: 8, 32>}, {pipeline_mode = #tpu.pipeline_mode<synchronous>, transform_indices = @transform_4, window_bounds = array<i64: 32, 64>}, {pipeline_mode = #tpu.pipeline_mode<synchronous>, transform_indices = @transform_5, window_bounds = array<i64: 3, 64, 64>}, {pipeline_mode = #tpu.pipeline_mode<synchronous>, transform_indices = @transform_6, window_bounds = array<i64: 3, 1, 64>}, {pipeline_mode = #tpu.pipeline_mode<synchronous>, transform_indices = @transform_7, window_bounds = array<i64: 64, 4>}, {pipeline_mode = #tpu.pipeline_mode<synchronous>, transform_indices = @transform_8, window_bounds = array<i64: 1, 4>}]} {
    %c0_i32 = arith.constant 0 : i32
    %0 = arith.cmpi eq, %arg0, %c0_i32 : i32
    %1 = arith.extui %0 : i1 to i32
    %c0_i32_0 = arith.constant 0 : i32
    %2 = arith.cmpi ne, %1, %c0_i32_0 : i32
    scf.if %2 {
      %cst_14 = arith.constant 0.000000e+00 : f32
      %24 = vector.broadcast %cst_14 : f32 to vector<64x32xf32>
      %c0_15 = arith.constant 0 : index
      %c0_16 = arith.constant 0 : index
      %25 = vector.load %arg10[%c0_15, %c0_16] : memref<64x32xf32, #tpu.memory_space<vmem>>, vector<64x32xf32>
      tpu.vector_store %arg10[%c0_15, %c0_16], %24 {strides = array<i32>} : memref<64x32xf32, #tpu.memory_space<vmem>>, vector<64x32xf32>,
    } else {
    }
    %c0 = arith.constant 0 : index
    %c0_1 = arith.constant 0 : index
    %3 = vector.load %arg2[%c0, %c0_1] : memref<128x8xbf16, #tpu.memory_space<vmem>>, vector<128x8xbf16>
    %c0_2 = arith.constant 0 : index
    %c0_3 = arith.constant 0 : index
    %4 = vector.load %arg4[%c0_2, %c0_3] : memref<8x32xbf16, #tpu.memory_space<vmem>>, vector<8x32xbf16>
    %cst = arith.constant dense<0.000000e+00> : vector<128x32xf32>
    %5 = tpu.matmul %3, %4, %cst {dimension_numbers = #tpu.dot_dimension_numbers<[1], [0], [0], [1], [0, 0, 1, 1], [], []>} : vector<128x8xbf16>, vector<8x32xbf16>, vector<128x32xf32> -> vector<128x32xf32>
    %c0_4 = arith.constant 0 : index
    %c0_5 = arith.constant 0 : index
    %6 = vector.load %arg3[%c0_4, %c0_5] : memref<128x32xbf16, #tpu.memory_space<vmem>>, vector<128x32xbf16>
    %7 = arith.extf %6 : vector<128x32xbf16> to vector<128x32xf32>
    %8 = arith.mulf %7, %5 : vector<128x32xf32>
    %9 = arith.truncf %8 : vector<128x32xf32> to vector<128x32xbf16>
    %10 = tpu.iota {dimensions = array<i32: 0>} : vector<64x128xi32>
    %c0_6 = arith.constant 0 : index
    %c0_7 = arith.constant 0 : index
    %11 = vector.load %arg1[%c0_6, %c0_7] : memref<1x128xi32, #tpu.memory_space<vmem>>, vector<1x128xi32>
    %12 = vector.broadcast %11 : vector<1x128xi32> to vector<64x128xi32>
    %13 = arith.cmpi eq, %10, %12 : vector<64x128xi32>
    %14 = arith.extui %13 : vector<64x128xi1> to vector<64x128xi32>
    %15 = arith.sitofp %14 : vector<64x128xi32> to vector<64x128xf32>
    %16 = arith.truncf %15 : vector<64x128xf32> to vector<64x128xbf16>
    %c0_8 = arith.constant 0 : index
    %c0_9 = arith.constant 0 : index
    %17 = vector.load %arg10[%c0_8, %c0_9] : memref<64x32xf32, #tpu.memory_space<vmem>>, vector<64x32xf32>
    %cst_10 = arith.constant dense<0.000000e+00> : vector<64x32xf32>
    %18 = tpu.matmul %16, %9, %cst_10 {dimension_numbers = #tpu.dot_dimension_numbers<[1], [0], [0], [1], [0, 0, 1, 1], [], []>} : vector<64x128xbf16>, vector<128x32xbf16>, vector<64x32xf32> -> vector<64x32xf32>
    %19 = arith.addf %17, %18 : vector<64x32xf32>
    %c0_11 = arith.constant 0 : index
    %c0_12 = arith.constant 0 : index
    %20 = vector.load %arg10[%c0_11, %c0_12] : memref<64x32xf32, #tpu.memory_space<vmem>>, vector<64x32xf32>
    tpu.vector_store %arg10[%c0_11, %c0_12], %19 {strides = array<i32>} : memref<64x32xf32, #tpu.memory_space<vmem>>, vector<64x32xf32>,
    %c3_i32 = arith.constant 3 : i32
    %21 = arith.cmpi eq, %arg0, %c3_i32 : i32
    %22 = arith.extui %21 : i1 to i32
    %c0_i32_13 = arith.constant 0 : i32
    %23 = arith.cmpi ne, %22, %c0_i32_13 : i32
    scf.if %23 {
      %c0_14 = arith.constant 0 : index
      %c0_15 = arith.constant 0 : index
      %24 = vector.load %arg10[%c0_14, %c0_15] : memref<64x32xf32, #tpu.memory_space<vmem>>, vector<64x32xf32>
      %25 = arith.truncf %24 : vector<64x32xf32> to vector<64x32xbf16>
      %c0_16 = arith.constant 0 : index
      %c0_17 = arith.constant 0 : index
      %26 = vector.load %arg5[%c0_16, %c0_17] : memref<32x64xbf16, #tpu.memory_space<vmem>>, vector<32x64xbf16>
      %cst_18 = arith.constant dense<0.000000e+00> : vector<64x64xf32>
      %27 = tpu.matmul %25, %26, %cst_18 {dimension_numbers = #tpu.dot_dimension_numbers<[1], [0], [0], [1], [0, 0, 1, 1], [], []>} : vector<64x32xbf16>, vector<32x64xbf16>, vector<64x64xf32> -> vector<64x64xf32>
      %28 = arith.truncf %27 : vector<64x64xf32> to vector<64x64xbf16>
      %c0_19 = arith.constant 0 : index
      %c0_20 = arith.constant 0 : index
      %c0_21 = arith.constant 0 : index
      %29 = vector.load %arg6[%c0_19, %c0_20, %c0_21] : memref<3x64x64xbf16, #tpu.memory_space<vmem>>, vector<1x64x64xbf16>
      %30 = vector.shape_cast %29 : vector<1x64x64xbf16> to vector<64x64xbf16>
      %cst_22 = arith.constant dense<0.000000e+00> : vector<64x64xf32>
      %31 = tpu.matmul %28, %30, %cst_22 {dimension_numbers = #tpu.dot_dimension_numbers<[1], [0], [0], [1], [0, 0, 1, 1], [], []>} : vector<64x64xbf16>, vector<64x64xbf16>, vector<64x64xf32> -> vector<64x64xf32>
      %c0_23 = arith.constant 0 : index
      %c0_24 = arith.constant 0 : index
      %c0_25 = arith.constant 0 : index
      %32 = vector.load %arg7[%c0_23, %c0_24, %c0_25] : memref<3x1x64xf32, #tpu.memory_space<vmem>>, vector<1x1x64xf32>
      %33 = vector.shape_cast %32 : vector<1x1x64xf32> to vector<1x64xf32>
      %34 = vector.broadcast %33 : vector<1x64xf32> to vector<64x64xf32>
      %35 = arith.addf %31, %34 : vector<64x64xf32>
      %36 = arith.negf %35 : vector<64x64xf32>
      %37 = math.exp %36 : vector<64x64xf32>
      %cst_26 = arith.constant 1.000000e+00 : f32
      %38 = vector.broadcast %cst_26 : f32 to vector<64x64xf32>
      %39 = arith.addf %38, %37 : vector<64x64xf32>
      %40 = arith.divf %38, %39 : vector<64x64xf32>
      %41 = arith.mulf %35, %40 : vector<64x64xf32>
      %42 = arith.truncf %41 : vector<64x64xf32> to vector<64x64xbf16>
      %c1 = arith.constant 1 : index
      %c0_27 = arith.constant 0 : index
      %c0_28 = arith.constant 0 : index
      %43 = vector.load %arg6[%c1, %c0_27, %c0_28] : memref<3x64x64xbf16, #tpu.memory_space<vmem>>, vector<1x64x64xbf16>
      %44 = vector.shape_cast %43 : vector<1x64x64xbf16> to vector<64x64xbf16>
      %cst_29 = arith.constant dense<0.000000e+00> : vector<64x64xf32>
      %45 = tpu.matmul %42, %44, %cst_29 {dimension_numbers = #tpu.dot_dimension_numbers<[1], [0], [0], [1], [0, 0, 1, 1], [], []>} : vector<64x64xbf16>, vector<64x64xbf16>, vector<64x64xf32> -> vector<64x64xf32>
      %c1_30 = arith.constant 1 : index
      %c0_31 = arith.constant 0 : index
      %c0_32 = arith.constant 0 : index
      %46 = vector.load %arg7[%c1_30, %c0_31, %c0_32] : memref<3x1x64xf32, #tpu.memory_space<vmem>>, vector<1x1x64xf32>
      %47 = vector.shape_cast %46 : vector<1x1x64xf32> to vector<1x64xf32>
      %48 = vector.broadcast %47 : vector<1x64xf32> to vector<64x64xf32>
      %49 = arith.addf %45, %48 : vector<64x64xf32>
      %50 = arith.negf %49 : vector<64x64xf32>
      %51 = math.exp %50 : vector<64x64xf32>
      %cst_33 = arith.constant 1.000000e+00 : f32
      %52 = vector.broadcast %cst_33 : f32 to vector<64x64xf32>
      %53 = arith.addf %52, %51 : vector<64x64xf32>
      %54 = arith.divf %52, %53 : vector<64x64xf32>
      %55 = arith.mulf %49, %54 : vector<64x64xf32>
      %56 = arith.truncf %55 : vector<64x64xf32> to vector<64x64xbf16>
      %c2 = arith.constant 2 : index
      %c0_34 = arith.constant 0 : index
      %c0_35 = arith.constant 0 : index
      %57 = vector.load %arg6[%c2, %c0_34, %c0_35] : memref<3x64x64xbf16, #tpu.memory_space<vmem>>, vector<1x64x64xbf16>
      %58 = vector.shape_cast %57 : vector<1x64x64xbf16> to vector<64x64xbf16>
      %cst_36 = arith.constant dense<0.000000e+00> : vector<64x64xf32>
      %59 = tpu.matmul %56, %58, %cst_36 {dimension_numbers = #tpu.dot_dimension_numbers<[1], [0], [0], [1], [0, 0, 1, 1], [], []>} : vector<64x64xbf16>, vector<64x64xbf16>, vector<64x64xf32> -> vector<64x64xf32>
      %c2_37 = arith.constant 2 : index
      %c0_38 = arith.constant 0 : index
      %c0_39 = arith.constant 0 : index
      %60 = vector.load %arg7[%c2_37, %c0_38, %c0_39] : memref<3x1x64xf32, #tpu.memory_space<vmem>>, vector<1x1x64xf32>
      %61 = vector.shape_cast %60 : vector<1x1x64xf32> to vector<1x64xf32>
      %62 = vector.broadcast %61 : vector<1x64xf32> to vector<64x64xf32>
      %63 = arith.addf %59, %62 : vector<64x64xf32>
      %64 = arith.negf %63 : vector<64x64xf32>
      %65 = math.exp %64 : vector<64x64xf32>
      %cst_40 = arith.constant 1.000000e+00 : f32
      %66 = vector.broadcast %cst_40 : f32 to vector<64x64xf32>
      %67 = arith.addf %66, %65 : vector<64x64xf32>
      %68 = arith.divf %66, %67 : vector<64x64xf32>
      %69 = arith.mulf %63, %68 : vector<64x64xf32>
      %cst_41 = arith.constant dense<0.000000e+00> : vector<64xf32>
      %70 = vector.multi_reduction <add>, %69, %cst_41 [0] : vector<64x64xf32> to vector<64xf32>
      %71 = vector.shape_cast %70 : vector<64xf32> to vector<1x64xf32>
      %72 = arith.truncf %71 : vector<1x64xf32> to vector<1x64xbf16>
      %c0_42 = arith.constant 0 : index
      %c0_43 = arith.constant 0 : index
      %73 = vector.load %arg8[%c0_42, %c0_43] : memref<64x4xbf16, #tpu.memory_space<vmem>>, vector<64x4xbf16>
      %cst_44 = arith.constant dense<0.000000e+00> : vector<1x4xf32>
      %74 = tpu.matmul %72, %73, %cst_44 {dimension_numbers = #tpu.dot_dimension_numbers<[1], [0], [0], [1], [0, 0, 1, 1], [], []>} : vector<1x64xbf16>, vector<64x4xbf16>, vector<1x4xf32> -> vector<1x4xf32>
      %c0_45 = arith.constant 0 : index
      %c0_46 = arith.constant 0 : index
      %75 = vector.load %arg9[%c0_45, %c0_46] : memref<1x4xf32, #tpu.memory_space<vmem>>, vector<1x4xf32>
      tpu.vector_store %arg9[%c0_45, %c0_46], %74 {strides = array<i32>} : memref<1x4xf32, #tpu.memory_space<vmem>>, vector<1x4xf32>,
    } else {
    }
    return
  }
  func.func @transform_0(%arg0: i32) -> (i32, i32) {
    %c0_i32 = arith.constant 0 : i32
    %c0_i32_0 = arith.constant 0 : i32
    return %c0_i32, %arg0 : i32, i32
  }
  func.func @transform_1(%arg0: i32) -> (i32, i32) {
    %c0_i32 = arith.constant 0 : i32
    %c0_i32_0 = arith.constant 0 : i32
    return %arg0, %c0_i32 : i32, i32
  }
  func.func @transform_2(%arg0: i32) -> (i32, i32) {
    %c0_i32 = arith.constant 0 : i32
    %c0_i32_0 = arith.constant 0 : i32
    return %arg0, %c0_i32 : i32, i32
  }
  func.func @transform_3(%arg0: i32) -> (i32, i32) {
    %c0_i32 = arith.constant 0 : i32
    %c0_i32_0 = arith.constant 0 : i32
    %c0_i32_1 = arith.constant 0 : i32
    return %c0_i32, %c0_i32_0 : i32, i32
  }
  func.func @transform_4(%arg0: i32) -> (i32, i32) {
    %c0_i32 = arith.constant 0 : i32
    %c0_i32_0 = arith.constant 0 : i32
    %c0_i32_1 = arith.constant 0 : i32
    return %c0_i32, %c0_i32_0 : i32, i32
  }
  func.func @transform_5(%arg0: i32) -> (i32, i32, i32) {
    %c0_i32 = arith.constant 0 : i32
    %c0_i32_0 = arith.constant 0 : i32
    %c0_i32_1 = arith.constant 0 : i32
    %c0_i32_2 = arith.constant 0 : i32
    return %c0_i32, %c0_i32_0, %c0_i32_1 : i32, i32, i32
  }
  func.func @transform_6(%arg0: i32) -> (i32, i32, i32) {
    %c0_i32 = arith.constant 0 : i32
    %c0_i32_0 = arith.constant 0 : i32
    %c0_i32_1 = arith.constant 0 : i32
    %c0_i32_2 = arith.constant 0 : i32
    return %c0_i32, %c0_i32_0, %c0_i32_1 : i32, i32, i32
  }
  func.func @transform_7(%arg0: i32) -> (i32, i32) {
    %c0_i32 = arith.constant 0 : i32
    %c0_i32_0 = arith.constant 0 : i32
    %c0_i32_1 = arith.constant 0 : i32
    return %c0_i32, %c0_i32_0 : i32, i32
  }
  func.func @transform_8(%arg0: i32) -> (i32, i32) {
    %c0_i32 = arith.constant 0 : i32
    %c0_i32_0 = arith.constant 0 : i32
    %c0_i32_1 = arith.constant 0 : i32
    return %c0_i32, %c0_i32_0 : i32, i32
  }
}

</mosaic_0001>

<bundles_post_ra>
// kernel: tpu_custom_call.1
= control target key start
LH: loop header
LB: loop body
LE: loop exit
PB: predicated region body
PF: predicated region fallthrough
CT: control target
= control target key end

     0   :  { %13 = vsyncpa [#allocation4], 0  ;;  %s2105_s27 = smov 0   ;;  %s2306_s0 = inlined_call_operand.vmem [shape: s32[1,512], index: 0, kind: input, shape index: {}]   ;;  %s2307_s1 = inlined_call_operand.vmem [shape: bf16[512,8], index: 1, kind: input, shape index: {}]   ;;  %s2308_s2 = inlined_call_operand.vmem [shape: bf16[512,32], index: 2, kind: input, shape index: {}]   ;;  %s2309_s3 = inlined_call_operand.vmem [shape: bf16[8,32], index: 3, kind: input, shape index: {}]   ;;  %s2310_s4 = inlined_call_operand.vmem [shape: bf16[32,64], index: 4, kind: input, shape index: {}]   ;;  %s2311_s5 = inlined_call_operand.vmem [shape: bf16[3,64,64], index: 5, kind: input, shape index: {}]   ;;  %s2312_s6 = inlined_call_operand.vmem [shape: f32[3,1,64], index: 6, kind: input, shape index: {}]   ;;  %s2313_s7 = inlined_call_operand.vmem [shape: bf16[64,4], index: 7, kind: input, shape index: {}]   ;;  %s2314_s8 = inlined_call_operand.hbm [shape: f32[1,4], index: 8, kind: output, shape index: {}]  }
   0x1 LB: > { %s2111_s28 = sadd.s32 4294967295, %s2053_s27   ;;  %p1526_p0 = scmp.ge.s32.totalorder %s2053_s27, 1  ;;  %s2053_s27 = sphi %s2105_s27, %s19_s27  }
   0x2   : > { %p278_p1 = scmp.lt.s32.totalorder %s2053_s27, 5 }
   0x4   : > { %p279_p2 = pnand %p1526_p0, %p278_p1 }
   0x5   : > { %p315_p3 = scmp.lt.s32.totalorder (!%p279_p2), %s2111_s28, 3  ;;  %s1527_s29 = sshll.u32 (!%p279_p2), %s2111_s28, 4 }
   0x6   : > { %282 = sbr.rel (%p279_p2) target bundleno = 1733 (0x6c5), region = 52  ;;  %p319_p4 = scmp.lt.s32.totalorder (!%p279_p2), %s1527_s29, 63 }
   0x7   : > { %p1531_p5 = scmp.ne.s32.totalorder (!%p279_p2), %s2111_s28, 0 }
   0xd   : > { %s2118_s30 = scalar_select %p315_p3, %s2111_s28, 3 }
   0xe   : > { %s2320_s29 = smov (!%p319_p4, %s1527_s29), 63  ;;  %334 = sbr.rel (%p1531_p5) target bundleno = 21 (0x15), region = 56 }
   0xf   : > { %s317_s11 = scalar_lea.vmem %s2306_s0, %s2118_s30  ;;  %s1528_s12 = sshll.u32 %s2320_s29, 2  ;;  %vm335_vm0 = vcmask (!%p1531_p5), 261120   ;;  %v2055_v0 = vmov (!%p1531_p5), 0.0  }
  0x10   : > { %s2127_s15 = scalar_lea.vmem %s2307_s1, %s1528_s12  ;;  %s2132_s18 = scalar_lea.vmem %s2308_s2, %s1528_s12  ;;  %336 = vst.msk [vmem:[#allocation2] sm:$0xff] (!%p1531_p5), %vm335_vm0, %v2055_v0  ;;  %337 = vst.msk [vmem:[#allocation2 + $0x8] sm:$0xff] (!%p1531_p5), %vm335_vm0, %v2055_v0 }
  0x11   : > { %338 = vst.msk [vmem:[#allocation2 + $0x10] sm:$0xff] (!%p1531_p5), %vm335_vm0, %v2055_v0  ;;  %339 = vst.msk [vmem:[#allocation2 + $0x18] sm:$0xff] (!%p1531_p5), %vm335_vm0, %v2055_v0 }
  0x12   : > { %340 = vst.msk [vmem:[#allocation2 + $0x20] sm:$0xff] (!%p1531_p5), %vm335_vm0, %v2055_v0  ;;  %341 = vst.msk [vmem:[#allocation2 + $0x28] sm:$0xff] (!%p1531_p5), %vm335_vm0, %v2055_v0 }
  0x13   : > { %342 = vst.msk [vmem:[#allocation2 + $0x30] sm:$0xff] (!%p1531_p5), %vm335_vm0, %v2055_v0  ;;  %343 = vst.msk [vmem:[#allocation2 + $0x38] sm:$0xff] (!%p1531_p5), %vm335_vm0, %v2055_v0 }
  0x15 PF: > { %v360_v1 = vld [vmem:[%s2309_s3] sm:$0xf]  ;;  %vm426_vm1 = vcmask 1043456   ;;  %vm401_vm2 = vcmask 64512   ;;  %v1896_v4 = vld [vmem:[%s2127_s15 + $0x8] sm:$0xff]   ;;  %v1897_v5 = vld [vmem:[%s2127_s15 + $0x10] sm:$0xff]   ;;  %v583_v11 = vlaneseq }
  0x16   : > { %v1895_v2 = vld [vmem:[%s2127_s15] sm:$0xff]   ;;  %1875 = vmatprep.subr.msk.bf16.mxu0 %vm426_vm1, %v360_v1  ;;  %v428_v3 = vsel %vm426_vm1, %v360_v1, 0  ;;  %v1898_v6 = vld [vmem:[%s2127_s15 + $0x18] sm:$0xff]   ;;  %v1900_v8 = vld [vmem:[%s2127_s15 + $0x28] sm:$0xff]   ;;  %v2056_v21 = vmov 1.0|1.0  }
  0x17   : > { %1746 = vmatpush3.bf16.msra.mxu0 %v428_v3  ;;  %1747 = vmatprep.mubr.msk.bf16.mxu0 %vm401_vm2, %v1895_v2  ;;  %v1899_v7 = vld [vmem:[%s2127_s15 + $0x20] sm:$0xff]   ;;  %v1901_v9 = vld [vmem:[%s2127_s15 + $0x30] sm:$0xff]   ;;  %v1902_v10 = vld [vmem:[%s2127_s15 + $0x38] sm:$0xff]   ;;  %v584_v12 = vshrl.u32 %v583_v11, 7  ;;  %vm706_vm15 = vcmask 261120   ;;  %p1565_p6 = scmp.ne.s32.totalorder %s2111_s28, 3 }
  0x18   : > { %v1548_v16 = vld [vmem:[%s317_s11] ss:$0 sm:$0xff]  ;;  %v1682_v24 = vld [vmem:[%s2132_s18 + $0x8] sm:$0xff]   ;;  %v1684_v38 = vld [vmem:[%s2132_s18 + $0x18] sm:$0xff]   ;;  %vm867_vm0 = vcmask (!%p1565_p6), 523264   ;;  %vm2058_vm1 = vmmov (!%p1565_p6), 0  }
  0x19   : > { %v585_v13 = vadd.s32 8, %v584_v12  ;;  %v588_v14 = vadd.s32 32, %v584_v12  ;;  %v589_v15 = vadd.s32 40, %v584_v12  ;;  %v586_v17 = vadd.s32 16, %v584_v12  ;;  %v1651_v25 = vld [vmem:[%s2132_s18] sm:$0xff]   ;;  %v1683_v40 = vld [vmem:[%s2132_s18 + $0x10] sm:$0xff]  }
  0x1a   : > { %1748 = vmatmul.mubr.msk.bf16.vlgmr.msra.gmra.mrb[0].mxu0 %vm401_vm2, %v1896_v4  ;;  %v587_v18 = vadd.s32 24, %v584_v12  ;;  %v590_v19 = vadd.s32 48, %v584_v12  ;;  %v591_v20 = vadd.s32 56, %v584_v12  ;;  %vm597_vm3 = vcmp.eq.s32.totalorder %v584_v12, %v1548_v16  ;;  %v1686_v54 = vld [vmem:[%s2132_s18 + $0x28] sm:$0xff]   ;;  %v1685_v56 = vld [vmem:[%s2132_s18 + $0x20] sm:$0xff]  }
  0x1b   : > { %1751 = vmatprep.mubr.msk.bf16.mxu0 %vm401_vm2, %v1897_v5  ;;  %vm598_vm4 = vcmp.eq.s32.totalorder %v585_v13, %v1548_v16  ;;  %vm601_vm5 = vcmp.eq.s32.totalorder %v588_v14, %v1548_v16  ;;  %vm602_vm7 = vcmp.eq.s32.totalorder %v589_v15, %v1548_v16  ;;  %vm599_vm8 = vcmp.eq.s32.totalorder %v586_v17, %v1548_v16  ;;  %v630_v22 = vld [vmem:[#allocation2 + $0x28] sm:$0xff] }
  0x1c   : > { %vm1557_vm6 = vmpackc.low %vm598_vm4, %vm597_vm3  ;;  %vm600_vm9 = vcmp.eq.s32.totalorder %v587_v18, %v1548_v16  ;;  %vm603_vm10 = vcmp.eq.s32.totalorder %v590_v19, %v1548_v16  ;;  %vm604_vm12 = vcmp.eq.s32.totalorder %v591_v20, %v1548_v16  ;;  %v1656_v26 = vunpack.c.l.bf16 %v1682_v24 }
  0x1d   : > { %vm1561_vm11 = vmpackc.low %vm602_vm7, %vm601_vm5  ;;  %v1657_v27 = vunpack.c.h.bf16 %v1682_v24  ;;  %v1652_v29 = vunpack.c.l.bf16 %v1651_v25  ;;  %v1653_v30 = vunpack.c.h.bf16 %v1651_v25  ;;  %v1664_v42 = vunpack.c.l.bf16 %v1684_v38 }
  0x1e   : > { %1783 = vmatprep.mubr.msk.bf16.mxu1 %vm1561_vm11, %v2056_v21  ;;  %vm2161_vm13 = vmpackc.low %vm600_vm9, %vm599_vm8  ;;  %v1665_v43 = vunpack.c.h.bf16 %v1684_v38  ;;  %v1660_v45 = vunpack.c.l.bf16 %v1683_v40  ;;  %v1661_v46 = vunpack.c.h.bf16 %v1683_v40  ;;  %v1672_v58 = vunpack.c.l.bf16 %v1686_v54 }
  0x1f   : > { %vm2165_vm14 = vmpackc.low %vm604_vm12, %vm603_vm10  ;;  %v1673_v59 = vunpack.c.h.bf16 %v1686_v54  ;;  %v1668_v61 = vunpack.c.l.bf16 %v1685_v56  ;;  %v1669_v62 = vunpack.c.h.bf16 %v1685_v56 }
  0x22   : > { %1752 = vmatmul.mubr.msk.bf16.gmra.mrb[4].mxu0 %vm401_vm2, %v1898_v6  ;;  %v1688_v6 = vld [vmem:[%s2132_s18 + $0x38] sm:$0xff]  }
  0x23   : > { %1755 = vmatprep.mubr.msk.bf16.mxu0 %vm401_vm2, %v1899_v7  ;;  %v1681_v11 = vunpack.c.h.bf16 %v1688_v6 }
  0x2a   : > { %1756 = vmatmul.mubr.msk.bf16.gmra.mrb[8].mxu0 %vm401_vm2, %v1900_v8  ;;  %v1687_v8 = vld [vmem:[%s2132_s18 + $0x30] sm:$0xff]  }
  0x2b   : > { %1759 = vmatprep.mubr.msk.bf16.mxu0 %vm401_vm2, %v1901_v9  ;;  %v1676_v13 = vunpack.c.l.bf16 %v1687_v8  ;;  %v1677_v14 = vunpack.c.h.bf16 %v1687_v8 }
  0x32   : > { %1760 = vmatmul.mubr.msk.bf16.gmra.mrb[12].mxu0 %vm401_vm2, %v1902_v10  ;;  %v1680_v10 = vunpack.c.l.bf16 %v1688_v6  ;;  %vm1454_vm2 = vcmask (!%p1565_p6), 24576  }
  0x33   : > { %1779 = vmatprep.mubr.msk.bf16.mxu0 %vm1557_vm6, %v2056_v21 }
  0xed   : > { %v1749_v28 = vpop.f32.mrb[0].mxu0 }
  0xee   : > { %v464_v31 = vpop.f32.mrb[1].mxu0  ;;  %v561_v33 = vmul.f32 %v1749_v28, %v1656_v26  ;;  %v631_v28 = vld [vmem:[#allocation2 + $0x30] sm:$0xff] }
  0xef   : > { %v1750_v32 = vpop.f32.mrb[2].mxu0  ;;  %v559_v36 = vmul.f32 %v1652_v29, %v464_v31  ;;  %v625_v29 = vld [vmem:[#allocation2] sm:$0xff] }
  0xf0   : > { %v562_v34 = vmul.f32 %v1750_v32, %v1657_v27  ;;  %v467_v35 = vpop.f32.mrb[3].mxu0  ;;  %v627_v27 = vld [vmem:[#allocation2 + $0x10] sm:$0xff] }
  0xf1   : > { %v560_v37 = vmul.f32 %v1653_v30, %v467_v35  ;;  %v629_v30 = vld [vmem:[#allocation2 + $0x20] sm:$0xff] }
  0xf2   : > { %v576_v39 = vpack.c.bf16 %v562_v34, %v561_v33  ;;  %v628_v33 = vld [vmem:[#allocation2 + $0x18] sm:$0xff] }
  0xf3   : > { %v575_v41 = vpack.c.bf16 %v560_v37, %v559_v36  ;;  %v632_v34 = vld [vmem:[#allocation2 + $0x38] sm:$0xff] }
  0xf5   : > { %v1753_v44 = vpop.f32.mrb[4].mxu0  ;;  %1763 = vmatprep.subr.bf16.mxu0 %v575_v41  ;;  %1859 = vmatprep.subr.bf16.mxu1 %v575_v41 }
  0xf6   : > { %v480_v47 = vpop.f32.mrb[5].mxu0  ;;  %1764 = vmatpush3.bf16.msra.mxu0 %v575_v41  ;;  %1867 = vmatpush3.bf16.msra.mxu1 %v575_v41  ;;  %v565_v49 = vmul.f32 %v1753_v44, %v1664_v42 }
  0xf7   : > { %v1754_v48 = vpop.f32.mrb[6].mxu0  ;;  %1765 = vmatprep.subr.bf16.mxu0 %v576_v39  ;;  %1860 = vmatprep.subr.bf16.mxu1 %v576_v39  ;;  %v563_v52 = vmul.f32 %v1660_v45, %v480_v47 }
  0xf8   : > { %v566_v50 = vmul.f32 %v1754_v48, %v1665_v43  ;;  %v483_v51 = vpop.f32.mrb[7].mxu0  ;;  %v1903_v48 = vld [vmem:[%s2310_s4] sm:$0xff] (!%p1565_p6)  }
  0xf9   : > { %v564_v53 = vmul.f32 %v1661_v46, %v483_v51 }
  0xfa   : > { %v578_v55 = vpack.c.bf16 %v566_v50, %v565_v49  ;;  %1766 = vmatpush3.bf16.msra.mxu0 %v576_v39  ;;  %1868 = vmatpush3.bf16.msra.mxu1 %v576_v39  ;;  %v626_v39 = vld [vmem:[#allocation2 + $0x8] sm:$0xff] }
  0xfb   : > { %v577_v57 = vpack.c.bf16 %v564_v53, %v563_v52  ;;  %v1904_v49 = vld [vmem:[%s2310_s4 + $0x8] sm:$0xff] (!%p1565_p6)  }
  0xfd   : > { %v1757_v60 = vpop.f32.mrb[8].mxu0  ;;  %1767 = vmatprep.subr.bf16.mxu0 %v577_v57  ;;  %1861 = vmatprep.subr.bf16.mxu1 %v577_v57 }
  0xfe   : > { %v496_v63 = vpop.f32.mrb[9].mxu0  ;;  %1768 = vmatpush3.bf16.msra.mxu0 %v577_v57  ;;  %1869 = vmatpush3.bf16.msra.mxu1 %v577_v57  ;;  %v569_v1 = vmul.f32 %v1757_v60, %v1672_v58  ;;  %v1905_v57 = vld [vmem:[%s2311_s5] sm:$0xff] (!%p1565_p6)  }
  0xff   : > { %v1758_v0 = vpop.f32.mrb[10].mxu0  ;;  %1769 = vmatprep.subr.bf16.mxu0 %v578_v55  ;;  %1862 = vmatprep.subr.bf16.mxu1 %v578_v55  ;;  %v567_v4 = vmul.f32 %v1668_v61, %v496_v63  ;;  %v1907_v61 = vld [vmem:[%s2311_s5 + $0x10] sm:$0xff] (!%p1565_p6)  }
 0x100   : > { %v570_v2 = vmul.f32 %v1758_v0, %v1673_v59  ;;  %v499_v3 = vpop.f32.mrb[11].mxu0  ;;  %v1906_v59 = vld [vmem:[%s2311_s5 + $0x8] sm:$0xff] (!%p1565_p6)  }
 0x101   : > { %v568_v5 = vmul.f32 %v1669_v62, %v499_v3 }
 0x102   : > { %v580_v7 = vpack.c.bf16 %v570_v2, %v569_v1  ;;  %1770 = vmatpush3.bf16.msra.mxu0 %v578_v55  ;;  %1870 = vmatpush3.bf16.msra.mxu1 %v578_v55  ;;  %v1908_v1 = vld [vmem:[%s2311_s5 + $0x18] sm:$0xff] (!%p1565_p6)  }
 0x103   : > { %v579_v9 = vpack.c.bf16 %v568_v5, %v567_v4 }
 0x105   : > { %v1761_v12 = vpop.f32.mrb[12].mxu0  ;;  %1771 = vmatprep.subr.bf16.mxu0 %v579_v9  ;;  %1863 = vmatprep.subr.bf16.mxu1 %v579_v9 }
 0x106   : > { %v512_v15 = vpop.f32.mrb[13].mxu0  ;;  %1772 = vmatpush3.bf16.msra.mxu0 %v579_v9  ;;  %1871 = vmatpush3.bf16.msra.mxu1 %v579_v9  ;;  %v573_v17 = vmul.f32 %v1761_v12, %v1680_v10 }
 0x107   : > { %v1762_v16 = vpop.f32.mrb[14].mxu0  ;;  %1773 = vmatprep.subr.bf16.mxu0 %v580_v7  ;;  %1864 = vmatprep.subr.bf16.mxu1 %v580_v7  ;;  %v571_v20 = vmul.f32 %v1676_v13, %v512_v15  ;;  %v1910_v15 = vld [vmem:[%s2311_s5 + $0x28] sm:$0xff] (!%p1565_p6)  }
 0x108   : > { %v574_v18 = vmul.f32 %v1762_v16, %v1681_v11  ;;  %v515_v19 = vpop.f32.mrb[15].mxu0  ;;  %v1911_v16 = vld [vmem:[%s2311_s5 + $0x30] sm:$0xff] (!%p1565_p6)  }
 0x109   : > { %v572_v24 = vmul.f32 %v1677_v14, %v515_v19  ;;  %v1909_v14 = vld [vmem:[%s2311_s5 + $0x20] sm:$0xff] (!%p1565_p6)  }
 0x10a   : > { %v582_v25 = vpack.c.bf16 %v574_v18, %v573_v17  ;;  %1774 = vmatpush3.bf16.msra.mxu0 %v580_v7  ;;  %1872 = vmatpush3.bf16.msra.mxu1 %v580_v7  ;;  %v1912_v17 = vld [vmem:[%s2311_s5 + $0x38] sm:$0xff] (!%p1565_p6)   ;;  %v1572_v18 = vld [vmem:[%s2312_s6] ss:$0 sm:$0xff] (!%p1565_p6) }
 0x10b   : > { %v581_v26 = vpack.c.bf16 %v572_v24, %v571_v20 }
 0x10d   : > { %1775 = vmatprep.subr.bf16.mxu0 %v581_v26  ;;  %1865 = vmatprep.subr.bf16.mxu1 %v581_v26 }
 0x10e   : > { %1776 = vmatpush3.bf16.msra.mxu0 %v581_v26  ;;  %1873 = vmatpush3.bf16.msra.mxu1 %v581_v26 }
 0x10f   : > { %1777 = vmatprep.subr.bf16.mxu0 %v582_v25  ;;  %1866 = vmatprep.subr.bf16.mxu1 %v582_v25 }
 0x112   : > { %1778 = vmatpush3.bf16.msra.mxu0 %v582_v25  ;;  %1874 = vmatpush3.bf16.msra.mxu1 %v582_v25 }
 0x113   : > { %1787 = vmatprep.subr.bf16.mxu0 (!%p1565_p6), %v1903_v48  ;;  %1799 = vmatprep.subr.bf16.mxu1 (!%p1565_p6), %v1905_v57 }
 0x115   : > { %1780 = vmatmul.mubr.msk.bf16.vlgmr.msra.gmra.mrb[16].mxu0 %vm2161_vm13, %v2056_v21  ;;  %1784 = vmatmul.mubr.msk.bf16.vlgmr.msra.gmra.mrb[0].mxu1 %vm2165_vm14, %v2056_v21 }
 0x116   : > { %1788 = vmatpush3.bf16.msra.mxu0 (!%p1565_p6), %v1903_v48  ;;  %1800 = vmatpush3.bf16.msra.mxu1 (!%p1565_p6), %v1905_v57 }
 0x117   : > { %1789 = vmatprep.subr.bf16.mxu0 (!%p1565_p6), %v1904_v49  ;;  %1801 = vmatprep.subr.bf16.mxu1 (!%p1565_p6), %v1906_v59 }
 0x11a   : > { %1790 = vmatpush3.bf16.msra.mxu0 (!%p1565_p6), %v1904_v49  ;;  %1802 = vmatpush3.bf16.msra.mxu1 (!%p1565_p6), %v1906_v59 }
 0x11b   : > { %1803 = vmatprep.subr.bf16.mxu1 (!%p1565_p6), %v1907_v61  ;;  %1815 = vmatprep.subr.bf16.mxu0 (!%p1565_p6), %v1909_v14 }
 0x11e   : > { %1804 = vmatpush3.bf16.msra.mxu1 (!%p1565_p6), %v1907_v61 }
 0x11f   : > { %1805 = vmatprep.subr.bf16.mxu1 (!%p1565_p6), %v1908_v1 }
 0x122   : > { %1806 = vmatpush3.bf16.msra.mxu1 (!%p1565_p6), %v1908_v1 }
 0x1e8   : > { %v1781_v31 = vpop.f32.mrb[16].mxu0  ;;  %v1785_v32 = vpop.f32.mrb[0].mxu1  ;;  %718 = sbr.rel (%p1565_p6) target bundleno = 1708 (0x6ac), region = 60 }
 0x1e9   : > { %v700_v35 = vadd.f32 %v1781_v31, %v627_v27  ;;  %v704_v36 = vadd.f32 %v1785_v32, %v631_v28  ;;  %v667_v37 = vpop.f32.mrb[17].mxu0  ;;  %v683_v38 = vpop.f32.mrb[1].mxu1 }
 0x1ea   : > { %v698_v40 = vadd.f32 %v667_v37, %v625_v29  ;;  %v702_v41 = vadd.f32 %v683_v38, %v629_v30  ;;  %v1782_v42 = vpop.f32.mrb[18].mxu0  ;;  %v1786_v23 = vpop.f32.mrb[2].mxu1 }
 0x1eb   : > { %709 = vst.msk [vmem:[#allocation2 + $0x10] sm:$0xff] %vm706_vm15, %v700_v35  ;;  %713 = vst.msk [vmem:[#allocation2 + $0x30] sm:$0xff] %vm706_vm15, %v704_v36  ;;  %v701_v21 = vadd.f32 %v1782_v42, %v628_v33  ;;  %v705_v43 = vadd.f32 %v1786_v23, %v632_v34  ;;  %v670_v44 = vpop.f32.mrb[19].mxu0  ;;  %v686_v45 = vpop.f32.mrb[3].mxu1 }
 0x1ec   : > { %707 = vst.msk [vmem:[#allocation2] sm:$0xff] %vm706_vm15, %v698_v40  ;;  %711 = vst.msk [vmem:[#allocation2 + $0x20] sm:$0xff] %vm706_vm15, %v702_v41  ;;  %v699_v46 = vadd.f32 %v670_v44, %v626_v39  ;;  %v703_v47 = vadd.f32 %v686_v45, %v630_v22 }
 0x1ed   : > { %710 = vst.msk [vmem:[#allocation2 + $0x18] sm:$0xff] %vm706_vm15, %v701_v21  ;;  %714 = vst.msk [vmem:[#allocation2 + $0x38] sm:$0xff] %vm706_vm15, %v705_v43 }
 0x1ee   : > { %708 = vst.msk [vmem:[#allocation2 + $0x8] sm:$0xff] %vm706_vm15, %v699_v46  ;;  %712 = vst.msk [vmem:[#allocation2 + $0x28] sm:$0xff] %vm706_vm15, %v703_v47 }
 0x1f2   : > { %v721_v53 = vld [vmem:[#allocation2 + $0x10] sm:$0xff] }
 0x1f3   : > { %v719_v50 = vld [vmem:[#allocation2] sm:$0xff]  ;;  %v725_v62 = vld [vmem:[#allocation2 + $0x30] sm:$0xff] }
 0x1f4   : > { %v722_v54 = vld [vmem:[#allocation2 + $0x18] sm:$0xff]  ;;  %v723_v55 = vld [vmem:[#allocation2 + $0x20] sm:$0xff] }
 0x1f5   : > { %v720_v51 = vld [vmem:[#allocation2 + $0x8] sm:$0xff]  ;;  %v728_v58 = vpack.c.bf16 %v722_v54, %v721_v53  ;;  %v726_v63 = vld [vmem:[#allocation2 + $0x38] sm:$0xff] }
 0x1f6   : > { %v727_v52 = vpack.c.bf16 %v720_v51, %v719_v50  ;;  %v724_v56 = vld [vmem:[#allocation2 + $0x28] sm:$0xff]  ;;  %v730_v0 = vpack.c.bf16 %v726_v63, %v725_v62 }
 0x1f7   : > { %v729_v60 = vpack.c.bf16 %v724_v56, %v723_v55 }
 0x1f8   : > { %1791 = vmatprep.mubr.msk.bf16.mxu0 %vm706_vm15, %v727_v52 }
 0x1f9   : > { %1792 = vmatmul.mubr.msk.bf16.vlgmr.msra.gmra.mrb[0].mxu0 %vm706_vm15, %v728_v58 }
 0x1fa   : > { %1795 = vmatprep.mubr.msk.bf16.mxu0 %vm706_vm15, %v729_v60  ;;  %1816 = vmatpush3.bf16.msra.mxu0 %v1909_v14 }
 0x1fb   : > { %1817 = vmatprep.subr.bf16.mxu0 %v1910_v15 }
 0x1fe   : > { %1818 = vmatpush3.bf16.msra.mxu0 %v1910_v15  ;;  %v1913_v15 = vld [vmem:[%s2311_s5 + $0x40] sm:$0xff]  }
 0x1ff   : > { %1819 = vmatprep.subr.bf16.mxu0 %v1911_v16  ;;  %1831 = vmatprep.subr.bf16.mxu1 %v1913_v15 }
 0x201   : > { %1796 = vmatmul.mubr.msk.bf16.gmra.mrb[4].mxu0 %vm706_vm15, %v730_v0 }
 0x202   : > { %1820 = vmatpush3.bf16.msra.mxu0 %v1911_v16  ;;  %v1914_v16 = vld [vmem:[%s2311_s5 + $0x48] sm:$0xff]  }
 0x203   : > { %1821 = vmatprep.subr.bf16.mxu0 %v1912_v17 }
 0x206   : > { %1822 = vmatpush3.bf16.msra.mxu0 %v1912_v17  ;;  %v1915_v17 = vld [vmem:[%s2311_s5 + $0x50] sm:$0xff]  }
 0x2cc   : > { %v1793_v2 = vpop.f32.mrb[0].mxu0 }
 0x2cd   : > { %v793_v3 = vpop.f32.mrb[1].mxu0 }
 0x2ce   : > { %v1794_v4 = vpop.f32.mrb[2].mxu0 }
 0x2cf   : > { %v825_v5 = vpack.c.bf16 %v1794_v4, %v1793_v2  ;;  %v796_v6 = vpop.f32.mrb[3].mxu0 }
 0x2d0   : > { %v824_v7 = vpack.c.bf16 %v796_v6, %v793_v3 }
 0x2d2   : > { %1807 = vmatprep.mubr.msk.bf16.mxu1 %vm867_vm0, %v824_v7 }
 0x2d3   : > { %1808 = vmatmul.mubr.msk.bf16.vlgmr.msra.gmra.mrb[0].mxu1 %vm867_vm0, %v825_v5 }
 0x2d4   : > { %v1797_v8 = vpop.f32.mrb[4].mxu0  ;;  %1832 = vmatpush3.bf16.msra.mxu1 %v1913_v15 }
 0x2d5   : > { %v809_v9 = vpop.f32.mrb[5].mxu0  ;;  %1833 = vmatprep.subr.bf16.mxu1 %v1914_v16 }
 0x2d6   : > { %v1798_v10 = vpop.f32.mrb[6].mxu0 }
 0x2d7   : > { %v827_v11 = vpack.c.bf16 %v1798_v10, %v1797_v8  ;;  %v812_v12 = vpop.f32.mrb[7].mxu0 }
 0x2d8   : > { %v826_v13 = vpack.c.bf16 %v812_v12, %v809_v9  ;;  %1834 = vmatpush3.bf16.msra.mxu1 %v1914_v16  ;;  %v1917_v16 = vld [vmem:[%s2313_s7] sm:$0xff]  }
 0x2d9   : > { %1835 = vmatprep.subr.bf16.mxu1 %v1915_v17 }
 0x2da   : > { %1811 = vmatprep.mubr.msk.bf16.mxu1 %vm867_vm0, %v826_v13 }
 0x2db   : > { %1812 = vmatmul.mubr.msk.bf16.gmra.mrb[4].mxu1 %vm867_vm0, %v827_v11 }
 0x2dc   : > { %1836 = vmatpush3.bf16.msra.mxu1 %v1915_v17  ;;  %v2057_v17 = vmov 0.0  }
 0x2dd   : > { %1847 = vmatprep.subr.bf16.mxu0 %v2057_v17 }
 0x3a6   : > { %v1809_v19 = vpop.f32.mrb[0].mxu1 }
 0x3a7   : > { %v923_v20 = vadd.f32 %v1809_v19, %v1572_v18  ;;  %v914_v24 = vpop.f32.mrb[1].mxu1  ;;  %v1598_v19 = vld [vmem:[%s2312_s6 + $0x1] ss:$0 sm:$0xff] }
 0x3a8   : > { %v915_v25 = vadd.f32 %v1572_v18, %v914_v24  ;;  %v1810_v26 = vpop.f32.mrb[2].mxu1 }
 0x3a9   : > { %v1583_v27 = vmul.f32 -1.442695, %v923_v20  ;;  %v926_v28 = vadd.f32 %v1810_v26, %v1572_v18  ;;  %v917_v29 = vpop.f32.mrb[3].mxu1 }
 0x3aa   : > { %v1581_v30 = vmul.f32 -1.442695, %v915_v25  ;;  %v918_v31 = vadd.f32 %v1572_v18, %v917_v29 }
 0x3ab   : > { %1921 = vpow2.f32 %v1583_v27  ;;  %v1584_v32 = vmul.f32 -1.442695, %v926_v28 }
 0x3ac   : > { %1923 = vpow2.f32 %v1581_v30  ;;  %v1582_v33 = vmul.f32 -1.442695, %v918_v31 }
 0x3ad   : > { %1925 = vpow2.f32 %v1584_v32 }
 0x3ae   : > { %1927 = vpow2.f32 %v1582_v33  ;;  %v1813_v34 = vpop.f32.mrb[4].mxu1 }
 0x3af   : > { %v939_v35 = vadd.f32 %v1813_v34, %v1572_v18  ;;  %v930_v36 = vpop.f32.mrb[5].mxu1 }
 0x3b0   : > { %v931_v37 = vadd.f32 %v1572_v18, %v930_v36  ;;  %v1814_v38 = vpop.f32.mrb[6].mxu1 }
 0x3b1   : > { %v1587_v39 = vmul.f32 -1.442695, %v939_v35  ;;  %v942_v22 = vadd.f32 %v1814_v38, %v1572_v18  ;;  %v933_v40 = vpop.f32.mrb[7].mxu1 }
 0x3b2   : > { %v1585_v41 = vmul.f32 -1.442695, %v931_v37  ;;  %v934_v42 = vadd.f32 %v1572_v18, %v933_v40  ;;  %v1916_v18 = vld [vmem:[%s2311_s5 + $0x58] sm:$0xff]  }
 0x3b3   : > { %1929 = vpow2.f32 %v1587_v39  ;;  %v1588_v23 = vmul.f32 -1.442695, %v942_v22  ;;  %1837 = vmatprep.subr.bf16.mxu1 %v1916_v18 }
 0x3b4   : > { %1931 = vpow2.f32 %v1585_v41  ;;  %v1586_v21 = vmul.f32 -1.442695, %v934_v42  ;;  %1838 = vmatpush3.bf16.msra.mxu1 %v1916_v18  ;;  %v1918_v18 = vld [vmem:[%s2313_s7 + $0x8] sm:$0xff]  }
 0x3b5   : > { %v1922_v43 = vpop.eup %1921  ;;  %1933 = vpow2.f32 %v1588_v23 }
 0x3b6   : > { %v1924_v44 = vpop.eup %1923  ;;  %v971_v45 = vadd.f32 1.0, %v1922_v43  ;;  %1935 = vpow2.f32 %v1586_v21 }
 0x3b7   : > { %v1926_v46 = vpop.eup %1925  ;;  %v969_v47 = vadd.f32 1.0, %v1924_v44 }
 0x3b8   : > { %v1928_v48 = vpop.eup %1927  ;;  %1937 = vrcp.f32 %v971_v45  ;;  %v972_v49 = vadd.f32 1.0, %v1926_v46 }
 0x3b9   : > { %1939 = vrcp.f32 %v969_v47  ;;  %v970_v50 = vadd.f32 1.0, %v1928_v48 }
 0x3ba   : > { %1941 = vrcp.f32 %v972_v49 }
 0x3bb   : > { %1943 = vrcp.f32 %v970_v50 }
 0x3bd   : > { %v1930_v51 = vpop.eup %1929 }
 0x3be   : > { %v1932_v52 = vpop.eup %1931  ;;  %v975_v53 = vadd.f32 1.0, %v1930_v51 }
 0x3bf   : > { %v1934_v54 = vpop.eup %1933  ;;  %v973_v55 = vadd.f32 1.0, %v1932_v52 }
 0x3c0   : > { %v1936_v56 = vpop.eup %1935  ;;  %1945 = vrcp.f32 %v975_v53  ;;  %v976_v57 = vadd.f32 1.0, %v1934_v54 }
 0x3c1   : > { %1947 = vrcp.f32 %v973_v55  ;;  %v974_v58 = vadd.f32 1.0, %v1936_v56 }
 0x3c2   : > { %v1938_v59 = vpop.eup %1937  ;;  %1949 = vrcp.f32 %v976_v57 }
 0x3c3   : > { %v1940_v60 = vpop.eup %1939  ;;  %1951 = vrcp.f32 %v974_v58  ;;  %v995_v63 = vmul.f32 %v1938_v59, %v923_v20 }
 0x3c4   : > { %v1942_v61 = vpop.eup %1941  ;;  %v993_v1 = vmul.f32 %v1940_v60, %v915_v25 }
 0x3c5   : > { %v1944_v62 = vpop.eup %1943  ;;  %v996_v0 = vmul.f32 %v1942_v61, %v926_v28 }
 0x3c6   : > { %v994_v2 = vmul.f32 %v1944_v62, %v918_v31 }
 0x3c7   : > { %v1002_v3 = vpack.c.bf16 %v996_v0, %v995_v63 }
 0x3c8   : > { %v1001_v4 = vpack.c.bf16 %v994_v2, %v993_v1 }
 0x3ca   : > { %v1946_v5 = vpop.eup %1945  ;;  %1823 = vmatprep.mubr.msk.bf16.mxu0 %vm867_vm0, %v1001_v4 }
 0x3cb   : > { %v1948_v6 = vpop.eup %1947  ;;  %1824 = vmatmul.mubr.msk.bf16.vlgmr.msra.gmra.mrb[8].mxu0 %vm867_vm0, %v1002_v3  ;;  %v999_v9 = vmul.f32 %v1946_v5, %v939_v35 }
 0x3cc   : > { %v1950_v7 = vpop.eup %1949  ;;  %v997_v11 = vmul.f32 %v1948_v6, %v931_v37  ;;  %1848 = vmatpush3.bf16.msra.mxu0 %v1917_v16 }
 0x3cd   : > { %v1952_v8 = vpop.eup %1951  ;;  %v1000_v10 = vmul.f32 %v1950_v7, %v942_v22  ;;  %1849 = vmatprep.subr.bf16.mxu0 %v2057_v17 }
 0x3ce   : > { %v998_v12 = vmul.f32 %v1952_v8, %v934_v42 }
 0x3cf   : > { %v1004_v13 = vpack.c.bf16 %v1000_v10, %v999_v9 }
 0x3d0   : > { %v1003_v14 = vpack.c.bf16 %v998_v12, %v997_v11  ;;  %1850 = vmatpush3.bf16.msra.mxu0 %v1918_v18 }
 0x3d1   : > { %1851 = vmatprep.subr.bf16.mxu0 %v2057_v17 }
 0x3d2   : > { %1827 = vmatprep.mubr.msk.bf16.mxu0 %vm867_vm0, %v1003_v14 }
 0x3d3   : > { %1828 = vmatmul.mubr.msk.bf16.gmra.mrb[12].mxu0 %vm867_vm0, %v1004_v13 }
 0x3d4   : > { %1855 = vmatprep.mubr.msk.bf16.mxu0 %vm2058_vm1, %v2057_v17 }
 0x49e   : > { %v1825_v20 = vpop.f32.mrb[8].mxu0 }
 0x49f   : > { %v1101_v24 = vadd.f32 %v1825_v20, %v1598_v19  ;;  %v1092_v25 = vpop.f32.mrb[9].mxu0  ;;  %v1920_v20 = vld [vmem:[%s2313_s7 + $0x18] sm:$0xff]  }
 0x4a0   : > { %v1093_v26 = vadd.f32 %v1598_v19, %v1092_v25  ;;  %v1826_v27 = vpop.f32.mrb[10].mxu0 }
 0x4a1   : > { %v1609_v28 = vmul.f32 -1.442695, %v1101_v24  ;;  %v1104_v29 = vadd.f32 %v1826_v27, %v1598_v19  ;;  %v1095_v30 = vpop.f32.mrb[11].mxu0 }
 0x4a2   : > { %v1607_v31 = vmul.f32 -1.442695, %v1093_v26  ;;  %v1096_v32 = vadd.f32 %v1598_v19, %v1095_v30 }
 0x4a3   : > { %1953 = vpow2.f32 %v1609_v28  ;;  %v1610_v33 = vmul.f32 -1.442695, %v1104_v29 }
 0x4a4   : > { %1955 = vpow2.f32 %v1607_v31  ;;  %v1608_v34 = vmul.f32 -1.442695, %v1096_v32 }
 0x4a5   : > { %1957 = vpow2.f32 %v1610_v33 }
 0x4a6   : > { %1959 = vpow2.f32 %v1608_v34  ;;  %v1829_v35 = vpop.f32.mrb[12].mxu0 }
 0x4a7   : > { %v1117_v36 = vadd.f32 %v1829_v35, %v1598_v19  ;;  %v1108_v37 = vpop.f32.mrb[13].mxu0 }
 0x4a8   : > { %v1109_v38 = vadd.f32 %v1598_v19, %v1108_v37  ;;  %v1830_v39 = vpop.f32.mrb[14].mxu0 }
 0x4a9   : > { %v1613_v22 = vmul.f32 -1.442695, %v1117_v36  ;;  %v1120_v40 = vadd.f32 %v1830_v39, %v1598_v19  ;;  %v1111_v41 = vpop.f32.mrb[15].mxu0 }
 0x4aa   : > { %v1611_v42 = vmul.f32 -1.442695, %v1109_v38  ;;  %v1112_v23 = vadd.f32 %v1598_v19, %v1111_v41  ;;  %v1919_v19 = vld [vmem:[%s2313_s7 + $0x10] sm:$0xff]  }
 0x4ab   : > { %1961 = vpow2.f32 %v1613_v22  ;;  %v1614_v21 = vmul.f32 -1.442695, %v1120_v40  ;;  %1852 = vmatpush3.bf16.msra.mxu0 %v1919_v19 }
 0x4ac   : > { %1963 = vpow2.f32 %v1611_v42  ;;  %v1612_v43 = vmul.f32 -1.442695, %v1112_v23  ;;  %1853 = vmatprep.subr.bf16.mxu0 %v2057_v17 }
 0x4ad   : > { %v1954_v44 = vpop.eup %1953  ;;  %1965 = vpow2.f32 %v1614_v21 }
 0x4ae   : > { %v1956_v45 = vpop.eup %1955  ;;  %v1149_v46 = vadd.f32 1.0, %v1954_v44  ;;  %1967 = vpow2.f32 %v1612_v43 }
 0x4af   : > { %v1958_v47 = vpop.eup %1957  ;;  %v1147_v48 = vadd.f32 1.0, %v1956_v45  ;;  %1854 = vmatpush3.bf16.msra.mxu0 %v1920_v20 }
 0x4b0   : > { %v1960_v49 = vpop.eup %1959  ;;  %1969 = vrcp.f32 %v1149_v46  ;;  %v1150_v50 = vadd.f32 1.0, %v1958_v47 }
 0x4b1   : > { %1971 = vrcp.f32 %v1147_v48  ;;  %v1148_v51 = vadd.f32 1.0, %v1960_v49 }
 0x4b2   : > { %1973 = vrcp.f32 %v1150_v50 }
 0x4b3   : > { %1975 = vrcp.f32 %v1148_v51 }
 0x4b5   : > { %v1962_v52 = vpop.eup %1961 }
 0x4b6   : > { %v1964_v53 = vpop.eup %1963  ;;  %v1153_v54 = vadd.f32 1.0, %v1962_v52 }
 0x4b7   : > { %v1966_v55 = vpop.eup %1965  ;;  %v1151_v56 = vadd.f32 1.0, %v1964_v53 }
 0x4b8   : > { %v1968_v57 = vpop.eup %1967  ;;  %1977 = vrcp.f32 %v1153_v54  ;;  %v1154_v58 = vadd.f32 1.0, %v1966_v55 }
 0x4b9   : > { %1979 = vrcp.f32 %v1151_v56  ;;  %v1152_v59 = vadd.f32 1.0, %v1968_v57 }
 0x4ba   : > { %v1970_v60 = vpop.eup %1969  ;;  %1981 = vrcp.f32 %v1154_v58 }
 0x4bb   : > { %v1972_v61 = vpop.eup %1971  ;;  %1983 = vrcp.f32 %v1152_v59  ;;  %v1173_v0 = vmul.f32 %v1970_v60, %v1101_v24  ;;  %v1624_v24 = vld [vmem:[%s2312_s6 + $0x2] ss:$0 sm:$0xff] }
 0x4bc   : > { %v1974_v62 = vpop.eup %1973  ;;  %v1171_v2 = vmul.f32 %v1972_v61, %v1093_v26 }
 0x4bd   : > { %v1976_v63 = vpop.eup %1975  ;;  %v1174_v1 = vmul.f32 %v1974_v62, %v1104_v29 }
 0x4be   : > { %v1172_v3 = vmul.f32 %v1976_v63, %v1096_v32 }
 0x4bf   : > { %v1180_v4 = vpack.c.bf16 %v1174_v1, %v1173_v0 }
 0x4c0   : > { %v1179_v5 = vpack.c.bf16 %v1172_v3, %v1171_v2 }
 0x4c2   : > { %v1978_v6 = vpop.eup %1977  ;;  %1839 = vmatprep.mubr.msk.bf16.mxu1 %vm867_vm0, %v1179_v5 }
 0x4c3   : > { %v1980_v7 = vpop.eup %1979  ;;  %1840 = vmatmul.mubr.msk.bf16.vlgmr.msra.gmra.mrb[8].mxu1 %vm867_vm0, %v1180_v4  ;;  %v1177_v10 = vmul.f32 %v1978_v6, %v1117_v36 }
 0x4c4   : > { %v1982_v8 = vpop.eup %1981  ;;  %v1175_v12 = vmul.f32 %v1980_v7, %v1109_v38 }
 0x4c5   : > { %v1984_v9 = vpop.eup %1983  ;;  %v1178_v11 = vmul.f32 %v1982_v8, %v1120_v40 }
 0x4c6   : > { %v1176_v13 = vmul.f32 %v1984_v9, %v1112_v23 }
 0x4c7   : > { %v1182_v14 = vpack.c.bf16 %v1178_v11, %v1177_v10 }
 0x4c8   : > { %v1181_v15 = vpack.c.bf16 %v1176_v13, %v1175_v12 }
 0x4ca   : > { %1843 = vmatprep.mubr.msk.bf16.mxu1 %vm867_vm0, %v1181_v15 }
 0x4cb   : > { %1844 = vmatmul.mubr.msk.bf16.gmra.mrb[12].mxu1 %vm867_vm0, %v1182_v14 }
 0x596   : > { %v1841_v25 = vpop.f32.mrb[8].mxu1 }
 0x597   : > { %v1279_v26 = vadd.f32 %v1841_v25, %v1624_v24  ;;  %v1270_v27 = vpop.f32.mrb[9].mxu1 }
 0x598   : > { %v1271_v28 = vadd.f32 %v1624_v24, %v1270_v27  ;;  %v1842_v29 = vpop.f32.mrb[10].mxu1 }
 0x599   : > { %v1635_v30 = vmul.f32 -1.442695, %v1279_v26  ;;  %v1282_v31 = vadd.f32 %v1842_v29, %v1624_v24  ;;  %v1273_v32 = vpop.f32.mrb[11].mxu1 }
 0x59a   : > { %v1633_v33 = vmul.f32 -1.442695, %v1271_v28  ;;  %v1274_v34 = vadd.f32 %v1624_v24, %v1273_v32 }
 0x59b   : > { %1985 = vpow2.f32 %v1635_v30  ;;  %v1636_v35 = vmul.f32 -1.442695, %v1282_v31 }
 0x59c   : > { %1987 = vpow2.f32 %v1633_v33  ;;  %v1634_v36 = vmul.f32 -1.442695, %v1274_v34 }
 0x59d   : > { %1989 = vpow2.f32 %v1636_v35 }
 0x59e   : > { %1991 = vpow2.f32 %v1634_v36  ;;  %v1845_v37 = vpop.f32.mrb[12].mxu1 }
 0x59f   : > { %v1295_v38 = vadd.f32 %v1845_v37, %v1624_v24  ;;  %v1286_v39 = vpop.f32.mrb[13].mxu1 }
 0x5a0   : > { %v1287_v22 = vadd.f32 %v1624_v24, %v1286_v39  ;;  %v1846_v40 = vpop.f32.mrb[14].mxu1 }
 0x5a1   : > { %v1639_v41 = vmul.f32 -1.442695, %v1295_v38  ;;  %v1298_v42 = vadd.f32 %v1846_v40, %v1624_v24  ;;  %v1289_v23 = vpop.f32.mrb[15].mxu1 }
 0x5a2   : > { %v1637_v21 = vmul.f32 -1.442695, %v1287_v22  ;;  %v1290_v43 = vadd.f32 %v1624_v24, %v1289_v23 }
 0x5a3   : > { %1993 = vpow2.f32 %v1639_v41  ;;  %v1640_v44 = vmul.f32 -1.442695, %v1298_v42 }
 0x5a4   : > { %1995 = vpow2.f32 %v1637_v21  ;;  %v1638_v45 = vmul.f32 -1.442695, %v1290_v43 }
 0x5a5   : > { %v1986_v46 = vpop.eup %1985  ;;  %1997 = vpow2.f32 %v1640_v44 }
 0x5a6   : > { %v1988_v47 = vpop.eup %1987  ;;  %v1327_v48 = vadd.f32 1.0, %v1986_v46  ;;  %1999 = vpow2.f32 %v1638_v45 }
 0x5a7   : > { %v1990_v49 = vpop.eup %1989  ;;  %v1325_v50 = vadd.f32 1.0, %v1988_v47 }
 0x5a8   : > { %v1992_v51 = vpop.eup %1991  ;;  %2001 = vrcp.f32 %v1327_v48  ;;  %v1328_v52 = vadd.f32 1.0, %v1990_v49 }
 0x5a9   : > { %2003 = vrcp.f32 %v1325_v50  ;;  %v1326_v53 = vadd.f32 1.0, %v1992_v51 }
 0x5aa   : > { %2005 = vrcp.f32 %v1328_v52 }
 0x5ab   : > { %2007 = vrcp.f32 %v1326_v53 }
 0x5ad   : > { %v1994_v54 = vpop.eup %1993 }
 0x5ae   : > { %v1996_v55 = vpop.eup %1995  ;;  %v1331_v56 = vadd.f32 1.0, %v1994_v54 }
 0x5af   : > { %v1998_v57 = vpop.eup %1997  ;;  %v1329_v58 = vadd.f32 1.0, %v1996_v55 }
 0x5b0   : > { %v2000_v59 = vpop.eup %1999  ;;  %2009 = vrcp.f32 %v1331_v56  ;;  %v1332_v60 = vadd.f32 1.0, %v1998_v57 }
 0x5b1   : > { %2011 = vrcp.f32 %v1329_v58  ;;  %v1330_v61 = vadd.f32 1.0, %v2000_v59 }
 0x5b2   : > { %v2002_v62 = vpop.eup %2001  ;;  %2013 = vrcp.f32 %v1332_v60 }
 0x5b3   : > { %v2004_v63 = vpop.eup %2003  ;;  %2015 = vrcp.f32 %v1330_v61  ;;  %v1351_v3 = vmul.f32 %v2002_v62, %v1279_v26 }
 0x5b4   : > { %v2006_v0 = vpop.eup %2005  ;;  %v1349_v1 = vmul.f32 %v2004_v63, %v1271_v28 }
 0x5b5   : > { %v2008_v2 = vpop.eup %2007  ;;  %v1352_v6 = vmul.f32 %v2006_v0, %v1282_v31  ;;  %v1360_v10 = vsel %vm867_vm0, %v1351_v3, 0.0 }
 0x5b6   : > { %v1350_v4 = vmul.f32 %v2008_v2, %v1274_v34  ;;  %v1357_v5 = vsel %vm867_vm0, %v1349_v1, 0.0 }
 0x5b7   : > { %v1362_v14 = vsel %vm867_vm0, %v1352_v6, 0.0 }
 0x5b8   : > { %v1358_v7 = vsel %vm867_vm0, %v1350_v4, 0.0 }
 0x5b9   : > { %v1359_v8 = vadd.f32 %v1358_v7, %v1357_v5 }
 0x5ba   : > { %v2010_v9 = vpop.eup %2009 }
 0x5bb   : > { %v2012_v11 = vpop.eup %2011  ;;  %v1361_v12 = vadd.f32 %v1360_v10, %v1359_v8  ;;  %v1355_v18 = vmul.f32 %v2010_v9, %v1295_v38 }
 0x5bc   : > { %v2014_v13 = vpop.eup %2013  ;;  %v1353_v15 = vmul.f32 %v2012_v11, %v1287_v22 }
 0x5bd   : > { %v2016_v16 = vpop.eup %2015  ;;  %v1363_v17 = vadd.f32 %v1362_v14, %v1361_v12  ;;  %v1356_v25 = vmul.f32 %v2014_v13, %v1298_v42  ;;  %v1368_v28 = vsel %vm867_vm0, %v1355_v18, 0.0 }
 0x5be   : > { %v1364_v19 = vsel %vm867_vm0, %v1353_v15, 0.0  ;;  %v1354_v20 = vmul.f32 %v2016_v16, %v1290_v43 }
 0x5bf   : > { %v1365_v24 = vadd.f32 %v1364_v19, %v1363_v17  ;;  %v1370_v30 = vsel %vm867_vm0, %v1356_v25, 0.0 }
 0x5c0   : > { %v1366_v26 = vsel %vm867_vm0, %v1354_v20, 0.0 }
 0x5c1   : > { %v1367_v27 = vadd.f32 %v1366_v26, %v1365_v24 }
 0x5c3   : > { %v1369_v29 = vadd.f32 %v1368_v28, %v1367_v27 }
 0x5c5   : > { %v1371_v31 = vadd.f32 %v1370_v30, %v1369_v29 }
 0x5c7   : > { %v1372_v32 = vrot.slane %v1371_v31, 4 }
 0x5c9   : > { %v1373_v33 = vadd.f32 %v1372_v32, %v1371_v31 }
 0x5cb   : > { %v1374_v34 = vrot.slane %v1373_v33, 2 }
 0x5cd   : > { %v1375_v35 = vadd.f32 %v1374_v34, %v1373_v33 }
 0x5cf   : > { %v1376_v36 = vrot.slane %v1375_v35, 1 }
 0x5d1   : > { %v1377_v37 = vadd.f32 %v1376_v36, %v1375_v35 }
 0x5d3   : > { %v1378_v38 = vpack.c.bf16 %v1377_v37, %v1377_v37 }
 0x5d5   : > { %1856 = vmatmul.mubr.msk.bf16.vlgmr.msra.gmra.mrb[16].mxu0 %vm867_vm0, %v1378_v38 }
 0x6a8   : > { %v1448_v39 = vpop.f32.mrb[16].mxu0 }
 0x6a9   : > { %1455 = vst.msk [vmem:[#allocation3] sm:$0x1] %vm1454_vm2, %v1448_v39  ;;  %v1857_v22 = vpop.f32.mrb[17].mxu0 }
 0x6aa   : > { %v1451_v40 = vpop.f32.mrb[18].mxu0 }
 0x6ab   : > { %v1858_v41 = vpop.f32.mrb[19].mxu0 }
 0x6ac PF: > { %p1880_p7 = scmp.eq.s32.totalorder %s2111_s28, 3  ;;  %s2059_s25 = smov [#allocation3]  }
 0x6ad   : > { %s1463_s26 = sshll.u32 %s2059_s25, 4  ;;  %s1464_s26 = int_to_ptr.vmem [resolvable:$true] %s1463_s26 }
 0x6ae   : > { %s2017_s29 = scalar_lea.vmem %s1464_s26, 16  ;;  %s2023_s30 = scalar_lea.vmem %s1464_s26, 32 }
 0x6af   : > { %p2018_p8 = scmp.ne.s32.totalorder %s1464_s26, %s2017_s29  ;;  %p2024_p11 = scmp.lt.s32.totalorder %s1464_s26, %s1464_s26 }
 0x6b0   : > { %p2025_p12 = scmp.lt.s32.totalorder %s2023_s30, %s2017_s29 }
 0x6b1   : > { %p2019_p9 = pnand %p2018_p8, %p1880_p7 }
 0x6b2   : > { %p2026_p13 = por %p2025_p12, %p2024_p11 }
 0x6b3   : > { %p2020_p10 = pneg %p2019_p9 }
 0x6b5   : > { %p2027_p0 = pnand %p2026_p13, %p2020_p10 }
 0x6b7   : > { %2030 = shalt.err (!%p2027_p0)
}
 0x6b8   : > { %s2031_s11 = scalar_lea.hbm %s2314_s8, 16 }
 0x6b9   : > { %p2032_p1 = scmp.ne.s32.totalorder %s2314_s8, %s2031_s11  ;;  %p2037_p4 = scmp.lt.u32.totalorder %s2031_s11, %s2314_s8 }
 0x6bb   : > { %p2033_p2 = pnand %p2032_p1, %p1880_p7 }
 0x6bd   : > { %p2034_p3 = pneg %p2033_p2 }
 0x6bf   : > { %p2039_p5 = pnand %p2037_p4, %p2034_p3 }
 0x6c1   : > { %2042 = shalt.err (!%p2039_p5)
}
 0x6c2   : > { %1877 = dma.vmem_to_hbm [thread:$0]  (%p1880_p7), %s1464_s26, 16, %s2314_s8, [#allocation4]  }
 0x6c3   : > { %2048 = dma.done.wait (%p1880_p7), [#allocation4], 16  }
 0x6c4   : > { %2050 = vsyncadd (%p1880_p7), [#allocation4], 4294967280 }
 0x6c5 PF: > { %s19_s27 = sadd.s32 1, %s2053_s27  }
 0x6c6   : > { %p16_p6 = scmp.ge.s32.totalorder %s19_s27, 6  }
 0x6c8   :  { %18 = sbr.rel (!%p16_p6) target bundleno = 1 (0x1), region = 97 }
 0x6cf   :  { %1476 = vsyncpa [#allocation4], 1 }
 0x6d0   :  { %1478 = vsyncpa [#allocation4 + $0x1], 1 }

</bundles_post_ra>
